<compile_context>
chip_gen: v5e
topology: v5e:2x2
jax: 0.10.0
libtpu: 0.0.40
codegen_flags: <defaults>
</compile_context>

<pallas_src>
import jax
import jax.numpy as jnp
from jax.experimental import pallas as pl
from jax.experimental.pallas import tpu as pltpu


# ------------------------------------------------------------------ kernel ---

def decoder_kernel(z_ref,
                   w1_ref, b1_ref,
                   w2_ref, b2_ref,
                   w3_ref, b3_ref,
                   w4_ref, b4_ref,
                   out_ref):
    wdt = w1_ref.dtype  # matmul operand dtype (f32 or bf16); accumulation stays f32.

    # Layer 1: latent -> layer_three, ReLU
    h = jnp.dot(z_ref[...].astype(wdt), w1_ref[...],
                preferred_element_type=jnp.float32)
    h = jnp.maximum(h + b1_ref[...], 0.0)
    # Layer 2: layer_three -> layer_two, ReLU
    h = jnp.dot(h.astype(wdt), w2_ref[...],
                preferred_element_type=jnp.float32)
    h = jnp.maximum(h + b2_ref[...], 0.0)
    # Layer 3: layer_two -> layer_one, ReLU
    h = jnp.dot(h.astype(wdt), w3_ref[...],
                preferred_element_type=jnp.float32)
    h = jnp.maximum(h + b3_ref[...], 0.0)
    # Output layer: layer_one -> input_layer, no activation
    h = jnp.dot(h.astype(wdt), w4_ref[...],
                preferred_element_type=jnp.float32)
    out_ref[...] = (h + b4_ref[...]).astype(out_ref.dtype)


# ----------------------------------------------------------------- helpers ---

def _round_up(n, m):
    return ((n + m - 1) // m) * m


def _cdiv(a, b):
    return -(-a // b)


def _pad_axis(x, axis, target):
    pad = target - x.shape[axis]
    if pad == 0:
        return x
    widths = [(0, 0)] * x.ndim
    widths[axis] = (0, pad)
    return jnp.pad(x, widths)


def _chip_profile():
    """Generation-aware knobs: TensorCores per chip and physical VMEM."""
    kind = ""
    try:
        kind = jax.devices()[0].device_kind.lower()
    except Exception:
        pass
    if ("v7" in kind) or ("7x" in kind):
        return {"num_tc": 2, "vmem_bytes": 64 << 20}   # v7x: 2 TCs, 64 MiB VMEM
    return {"num_tc": 1, "vmem_bytes": 128 << 20}       # v5e/v6e: 1 TC, 128 MiB VMEM


def _pick_batch_tile(B, batch_tile, bytes_per_row, num_tc, act_vmem_budget):
    """Choose the batch tile: large enough to amortize per-step overhead, small enough
    to fit the VMEM budget, and balanced across TensorCores on dual-TC chips."""
    tb_cap = max(8, (act_vmem_budget // max(bytes_per_row, 1)) // 8 * 8)
    tb = min(batch_tile, tb_cap, B)

    if tb >= B:
        # Whole batch fits in one block (block dim == full array dim is always legal).
        if num_tc > 1 and B >= 16:
            # Split into num_tc near-equal steps so both TensorCores are busy.
            return max(8, _round_up(_cdiv(B, num_tc), 8))
        return B

    # Multiple grid steps: tile must be a multiple of 8 (f32 sublane alignment).
    tb = max(8, (tb // 8) * 8)
    if num_tc > 1:
        steps = _cdiv(B, tb)
        target = _round_up(steps, num_tc)          # even step count -> balanced TC load
        tb = max(8, _round_up(_cdiv(B, target), 8))
    return tb


# ------------------------------------------------------------ param prep -----

def prepare_decoder_params(params, weights_dtype=None):
    """One-time padding of hidden/output feature dims to multiples of 128 lanes and
    optional bf16 cast of the weights. Zero rows/cols + zero bias padding keep the
    math exact (ReLU(0 + 0) = 0 propagates zeros through the padded lanes).
    The latent (K) dim of w1 is NOT padded — z is consumed at its natural width."""
    w1, b1 = params["w1"], params["b1"]
    w2, b2 = params["w2"], params["b2"]
    w3, b3 = params["w3"], params["b3"]
    w4, b4 = params["w4"], params["b4"]
    out_dim = w4.shape[1]

    H1p = _round_up(w1.shape[1], 128)
    H2p = _round_up(w2.shape[1], 128)
    H3p = _round_up(w3.shape[1], 128)
    Op = _round_up(out_dim, 128)

    w1p = _pad_axis(w1, 1, H1p)
    w2p = _pad_axis(_pad_axis(w2, 0, H1p), 1, H2p)
    w3p = _pad_axis(_pad_axis(w3, 0, H2p), 1, H3p)
    w4p = _pad_axis(_pad_axis(w4, 0, H3p), 1, Op)
    b1p = _pad_axis(b1, 1, H1p)
    b2p = _pad_axis(b2, 1, H2p)
    b3p = _pad_axis(b3, 1, H3p)
    b4p = _pad_axis(b4, 1, Op)

    if weights_dtype is not None:
        # Weights (matmul operands) only; biases stay f32 since the bias add / ReLU
        # happen in the f32 accumulation space.
        w1p = w1p.astype(weights_dtype)
        w2p = w2p.astype(weights_dtype)
        w3p = w3p.astype(weights_dtype)
        w4p = w4p.astype(weights_dtype)

    return {
        "w1": w1p, "b1": b1p, "w2": w2p, "b2": b2p,
        "w3": w3p, "b3": b3p, "w4": w4p, "b4": b4p,
        "out_dim": out_dim,
    }


# ----------------------------------------------------------------- wrapper ---

def decoder_forward(z, prepared, *, batch_tile=4096, out_dtype=None):
    """z: (B, size_latent_space). prepared: output of prepare_decoder_params().
    out_dtype: optionally jnp.bfloat16 to halve the output HBM stream."""
    B, L = z.shape
    w1p, b1p = prepared["w1"], prepared["b1"]
    w2p, b2p = prepared["w2"], prepared["b2"]
    w3p, b3p = prepared["w3"], prepared["b3"]
    w4p, b4p = prepared["w4"], prepared["b4"]
    out_dim = prepared["out_dim"]
    Op = w4p.shape[1]
    H1p, H2p, H3p = w1p.shape[1], w2p.shape[1], w3p.shape[1]

    if out_dtype is None:
        out_dtype = z.dtype
    in_itemsize = jnp.dtype(z.dtype).itemsize
    out_itemsize = jnp.dtype(out_dtype).itemsize

    weight_bytes = sum(int(a.size) * jnp.dtype(a.dtype).itemsize
                       for a in (w1p, b1p, w2p, b2p, w3p, b3p, w4p, b4p))

    # Per-batch-row VMEM footprint: double-buffered z + out blocks, plus a few
    # live f32 intermediates (tb x 128 each).
    bytes_per_row = 2 * L * in_itemsize + 2 * Op * out_itemsize + 3 * 128 * 4

    chip = _chip_profile()
    vmem_cap = int(0.75 * chip["vmem_bytes"])                 # leave headroom
    act_budget = max(4 << 20, vmem_cap - 2 * weight_bytes - (4 << 20))

    tb = _pick_batch_tile(B, batch_tile, bytes_per_row, chip["num_tc"], act_budget)
    grid = (_cdiv(B, tb),)

    vmem_limit = min(max(tb * bytes_per_row + 2 * weight_bytes + (2 << 20), 32 << 20),
                     vmem_cap)

    # Weights/biases are small -> keep them fully resident in VMEM (constant index map
    # means they are only fetched once across the whole grid).
    full = lambda arr: pl.BlockSpec(arr.shape, lambda i: (0,) * arr.ndim)

    # Advisory cost hint for XLA's scheduler.
    flops = 2 * B * (L * H1p + H1p * H2p + H2p * H3p + H3p * Op)
    bytes_accessed = B * L * in_itemsize + B * Op * out_itemsize + weight_bytes
    cost = pl.CostEstimate(flops=int(flops), transcendentals=0,
                           bytes_accessed=int(bytes_accessed))

    out_padded = pl.pallas_call(
        decoder_kernel,
        out_shape=jax.ShapeDtypeStruct((B, Op), out_dtype),
        grid_spec=pltpu.PrefetchScalarGridSpec(
            num_scalar_prefetch=0,
            grid=grid,
            in_specs=[
                pl.BlockSpec((tb, L), lambda i: (i, 0)),   # z: unpadded latent dim
                full(w1p), full(b1p),
                full(w2p), full(b2p),
                full(w3p), full(b3p),
                full(w4p), full(b4p),
            ],
            out_specs=pl.BlockSpec((tb, Op), lambda i: (i, 0)),
        ),
        compiler_params=pltpu.CompilerParams(
            dimension_semantics=("parallel",),
            vmem_limit_bytes=int(vmem_limit)),
        cost_estimate=cost,
    )(z, w1p, b1p, w2p, b2p, w3p, b3p, w4p, b4p)

    if Op != out_dim:
        out_padded = out_padded[:, :out_dim]
    return out_padded


# ------------------------------------------------------------------- init ---

def init_decoder_params(key,
                        size_input_layer,
                        size_layer_one,
                        size_layer_two,
                        size_layer_three,
                        size_latent_space,
                        dtype=jnp.float32):
    """Deterministic init mimicking nn.Linear's U(-1/sqrt(fan_in), 1/sqrt(fan_in)).
    Weights stored as (in, out) = transpose of PyTorch's (out, in)."""
    dims = [
        (size_latent_space, size_layer_three),  # input_layer
        (size_layer_three, size_layer_two),     # hidden_layer1
        (size_layer_two, size_layer_one),       # hidden_layer2
        (size_layer_one, size_input_layer),     # output_layer
    ]
    params = {}
    keys = jax.random.split(key, 2 * len(dims))
    for idx, (fan_in, fan_out) in enumerate(dims):
        bound = 1.0 / jnp.sqrt(jnp.array(fan_in, dtype))
        w = jax.random.uniform(keys[2 * idx], (fan_in, fan_out),
                               dtype=dtype, minval=-bound, maxval=bound)
        b = jax.random.uniform(keys[2 * idx + 1], (1, fan_out),
                               dtype=dtype, minval=-bound, maxval=bound)
        params[f"w{idx + 1}"] = w
        params[f"b{idx + 1}"] = b
    return params


def decoder_reference(z, params):
    """Pure-JAX reference for correctness checking (uses raw, unpadded params)."""
    h = jax.nn.relu(z @ params["w1"] + params["b1"])
    h = jax.nn.relu(h @ params["w2"] + params["b2"])
    h = jax.nn.relu(h @ params["w3"] + params["b3"])
    return h @ params["w4"] + params["b4"]


# -------------------------------------------------------------------- main ---

if __name__ == "__main__":
    # Small shapes consistent with the module's constructor arguments.
    size_input_layer = 256
    size_layer_one = 128
    size_layer_two = 64
    size_layer_three = 48
    size_latent_space = 16

    key = jax.random.PRNGKey(0)
    pkey, zkey1, zkey2, zkey3 = jax.random.split(key, 4)

    raw_params = init_decoder_params(
        pkey, size_input_layer, size_layer_one, size_layer_two,
        size_layer_three, size_latent_space)

    # One-time weight/bias padding (and optional bf16 cast) at param-load time.
    prepared_f32 = prepare_decoder_params(raw_params)
    prepared_bf16 = prepare_decoder_params(raw_params, weights_dtype=jnp.bfloat16)

    # --- small single-block case (f32, exact parity with PyTorch semantics) ---
    batch = 8
    z = jax.random.normal(zkey1, (batch, size_latent_space), dtype=jnp.float32)
    out = jax.block_until_ready(decoder_forward(z, prepared_f32))
    ref = decoder_reference(z, raw_params)
    assert out.shape == (batch, size_input_layer)
    assert jnp.allclose(out, ref, atol=1e-4, rtol=1e-4)

    # --- batch that does not divide the tile (exercises ragged / TC-split path) ---
    batch2 = 50
    z2 = jax.random.normal(zkey2, (batch2, size_latent_space), dtype=jnp.float32)
    out2 = jax.block_until_ready(decoder_forward(z2, prepared_f32))
    ref2 = decoder_reference(z2, raw_params)
    assert out2.shape == (batch2, size_input_layer)
    assert jnp.allclose(out2, ref2, atol=1e-4, rtol=1e-4)

    # --- multi-step grid with a small tile (exercises the pipelined batch loop) ---
    batch3 = 300
    z3 = jax.random.normal(zkey3, (batch3, size_latent_space), dtype=jnp.float32)
    out3 = jax.block_until_ready(decoder_forward(z3, prepared_f32, batch_tile=128))
    ref3 = decoder_reference(z3, raw_params)
    assert out3.shape == (batch3, size_input_layer)
    assert jnp.allclose(out3, ref3, atol=1e-4, rtol=1e-4)

    # --- bf16 weight/operand path (recommended default on v5e), f32 accumulation ---
    out4 = jax.block_until_ready(decoder_forward(z2, prepared_bf16))
    assert out4.shape == (batch2, size_input_layer)
    assert jnp.allclose(out4, ref2, atol=1e-1, rtol=1e-1)

    print("KERNEL_OK")
</pallas_src>

<mosaic_0001>
module attributes {stable_mosaic.version = 11 : i64} {
  func.func @decoder_kernel(%arg0: i32, %arg1: memref<8x16xf32, #tpu.memory_space<vmem>>, %arg2: memref<16x128xf32, #tpu.memory_space<vmem>>, %arg3: memref<1x128xf32, #tpu.memory_space<vmem>>, %arg4: memref<128x128xf32, #tpu.memory_space<vmem>>, %arg5: memref<1x128xf32, #tpu.memory_space<vmem>>, %arg6: memref<128x128xf32, #tpu.memory_space<vmem>>, %arg7: memref<1x128xf32, #tpu.memory_space<vmem>>, %arg8: memref<128x256xf32, #tpu.memory_space<vmem>>, %arg9: memref<1x256xf32, #tpu.memory_space<vmem>>, %arg10: memref<8x256xf32, #tpu.memory_space<vmem>>) attributes {dimension_semantics = [#tpu.dimension_semantics<parallel>], iteration_bounds = array<i64: 1>, scalar_prefetch = 0 : i64, scratch_operands = 0 : i64, tpu.core_type = #tpu.core_type<tc>, window_params = [{transform_indices = @transform_0, window_bounds = array<i64: 8, 16>}, {pipeline_mode = #tpu.pipeline_mode<synchronous>, transform_indices = @transform_1, window_bounds = array<i64: 16, 128>}, {pipeline_mode = #tpu.pipeline_mode<synchronous>, transform_indices = @transform_2, window_bounds = array<i64: 1, 128>}, {pipeline_mode = #tpu.pipeline_mode<synchronous>, transform_indices = @transform_3, window_bounds = array<i64: 128, 128>}, {pipeline_mode = #tpu.pipeline_mode<synchronous>, transform_indices = @transform_4, window_bounds = array<i64: 1, 128>}, {pipeline_mode = #tpu.pipeline_mode<synchronous>, transform_indices = @transform_5, window_bounds = array<i64: 128, 128>}, {pipeline_mode = #tpu.pipeline_mode<synchronous>, transform_indices = @transform_6, window_bounds = array<i64: 1, 128>}, {pipeline_mode = #tpu.pipeline_mode<synchronous>, transform_indices = @transform_7, window_bounds = array<i64: 128, 256>}, {pipeline_mode = #tpu.pipeline_mode<synchronous>, transform_indices = @transform_8, window_bounds = array<i64: 1, 256>}, {transform_indices = @transform_9, window_bounds = array<i64: 8, 256>}]} {
    %c0 = arith.constant 0 : index
    %c0_0 = arith.constant 0 : index
    %0 = vector.load %arg1[%c0, %c0_0] : memref<8x16xf32, #tpu.memory_space<vmem>>, vector<8x16xf32>
    %c0_1 = arith.constant 0 : index
    %c0_2 = arith.constant 0 : index
    %1 = vector.load %arg2[%c0_1, %c0_2] : memref<16x128xf32, #tpu.memory_space<vmem>>, vector<16x128xf32>
    %cst = arith.constant dense<0.000000e+00> : vector<8x128xf32>
    %2 = tpu.matmul %0, %1, %cst {dimension_numbers = #tpu.dot_dimension_numbers<[1], [0], [0], [1], [0, 0, 1, 1], [], []>} : vector<8x16xf32>, vector<16x128xf32>, vector<8x128xf32> -> vector<8x128xf32>
    %c0_3 = arith.constant 0 : index
    %c0_4 = arith.constant 0 : index
    %3 = vector.load %arg3[%c0_3, %c0_4] : memref<1x128xf32, #tpu.memory_space<vmem>>, vector<1x128xf32>
    %4 = vector.broadcast %3 : vector<1x128xf32> to vector<8x128xf32>
    %5 = arith.addf %2, %4 : vector<8x128xf32>
    %cst_5 = arith.constant 0.000000e+00 : f32
    %6 = vector.broadcast %cst_5 : f32 to vector<8x128xf32>
    %7 = arith.maximumf %5, %6 : vector<8x128xf32>
    %c0_6 = arith.constant 0 : index
    %c0_7 = arith.constant 0 : index
    %8 = vector.load %arg4[%c0_6, %c0_7] : memref<128x128xf32, #tpu.memory_space<vmem>>, vector<128x128xf32>
    %cst_8 = arith.constant dense<0.000000e+00> : vector<8x128xf32>
    %9 = tpu.matmul %7, %8, %cst_8 {dimension_numbers = #tpu.dot_dimension_numbers<[1], [0], [0], [1], [0, 0, 1, 1], [], []>} : vector<8x128xf32>, vector<128x128xf32>, vector<8x128xf32> -> vector<8x128xf32>
    %c0_9 = arith.constant 0 : index
    %c0_10 = arith.constant 0 : index
    %10 = vector.load %arg5[%c0_9, %c0_10] : memref<1x128xf32, #tpu.memory_space<vmem>>, vector<1x128xf32>
    %11 = vector.broadcast %10 : vector<1x128xf32> to vector<8x128xf32>
    %12 = arith.addf %9, %11 : vector<8x128xf32>
    %cst_11 = arith.constant 0.000000e+00 : f32
    %13 = vector.broadcast %cst_11 : f32 to vector<8x128xf32>
    %14 = arith.maximumf %12, %13 : vector<8x128xf32>
    %c0_12 = arith.constant 0 : index
    %c0_13 = arith.constant 0 : index
    %15 = vector.load %arg6[%c0_12, %c0_13] : memref<128x128xf32, #tpu.memory_space<vmem>>, vector<128x128xf32>
    %cst_14 = arith.constant dense<0.000000e+00> : vector<8x128xf32>
    %16 = tpu.matmul %14, %15, %cst_14 {dimension_numbers = #tpu.dot_dimension_numbers<[1], [0], [0], [1], [0, 0, 1, 1], [], []>} : vector<8x128xf32>, vector<128x128xf32>, vector<8x128xf32> -> vector<8x128xf32>
    %c0_15 = arith.constant 0 : index
    %c0_16 = arith.constant 0 : index
    %17 = vector.load %arg7[%c0_15, %c0_16] : memref<1x128xf32, #tpu.memory_space<vmem>>, vector<1x128xf32>
    %18 = vector.broadcast %17 : vector<1x128xf32> to vector<8x128xf32>
    %19 = arith.addf %16, %18 : vector<8x128xf32>
    %cst_17 = arith.constant 0.000000e+00 : f32
    %20 = vector.broadcast %cst_17 : f32 to vector<8x128xf32>
    %21 = arith.maximumf %19, %20 : vector<8x128xf32>
    %c0_18 = arith.constant 0 : index
    %c0_19 = arith.constant 0 : index
    %22 = vector.load %arg8[%c0_18, %c0_19] : memref<128x256xf32, #tpu.memory_space<vmem>>, vector<128x256xf32>
    %cst_20 = arith.constant dense<0.000000e+00> : vector<8x256xf32>
    %23 = tpu.matmul %21, %22, %cst_20 {dimension_numbers = #tpu.dot_dimension_numbers<[1], [0], [0], [1], [0, 0, 1, 1], [], []>} : vector<8x128xf32>, vector<128x256xf32>, vector<8x256xf32> -> vector<8x256xf32>
    %c0_21 = arith.constant 0 : index
    %c0_22 = arith.constant 0 : index
    %24 = vector.load %arg9[%c0_21, %c0_22] : memref<1x256xf32, #tpu.memory_space<vmem>>, vector<1x256xf32>
    %25 = vector.broadcast %24 : vector<1x256xf32> to vector<8x256xf32>
    %26 = arith.addf %23, %25 : vector<8x256xf32>
    %c0_23 = arith.constant 0 : index
    %c0_24 = arith.constant 0 : index
    %27 = vector.load %arg10[%c0_23, %c0_24] : memref<8x256xf32, #tpu.memory_space<vmem>>, vector<8x256xf32>
    tpu.vector_store %arg10[%c0_23, %c0_24], %26 {strides = array<i32>} : memref<8x256xf32, #tpu.memory_space<vmem>>, vector<8x256xf32>,
    return
  }
  func.func @transform_0(%arg0: i32) -> (i32, i32) {
    %c0_i32 = arith.constant 0 : i32
    %c0_i32_0 = arith.constant 0 : i32
    return %arg0, %c0_i32 : i32, i32
  }
  func.func @transform_1(%arg0: i32) -> (i32, i32) {
    %c0_i32 = arith.constant 0 : i32
    %c0_i32_0 = arith.constant 0 : i32
    %c0_i32_1 = arith.constant 0 : i32
    return %c0_i32, %c0_i32_0 : i32, i32
  }
  func.func @transform_2(%arg0: i32) -> (i32, i32) {
    %c0_i32 = arith.constant 0 : i32
    %c0_i32_0 = arith.constant 0 : i32
    %c0_i32_1 = arith.constant 0 : i32
    return %c0_i32, %c0_i32_0 : i32, i32
  }
  func.func @transform_3(%arg0: i32) -> (i32, i32) {
    %c0_i32 = arith.constant 0 : i32
    %c0_i32_0 = arith.constant 0 : i32
    %c0_i32_1 = arith.constant 0 : i32
    return %c0_i32, %c0_i32_0 : i32, i32
  }
  func.func @transform_4(%arg0: i32) -> (i32, i32) {
    %c0_i32 = arith.constant 0 : i32
    %c0_i32_0 = arith.constant 0 : i32
    %c0_i32_1 = arith.constant 0 : i32
    return %c0_i32, %c0_i32_0 : i32, i32
  }
  func.func @transform_5(%arg0: i32) -> (i32, i32) {
    %c0_i32 = arith.constant 0 : i32
    %c0_i32_0 = arith.constant 0 : i32
    %c0_i32_1 = arith.constant 0 : i32
    return %c0_i32, %c0_i32_0 : i32, i32
  }
  func.func @transform_6(%arg0: i32) -> (i32, i32) {
    %c0_i32 = arith.constant 0 : i32
    %c0_i32_0 = arith.constant 0 : i32
    %c0_i32_1 = arith.constant 0 : i32
    return %c0_i32, %c0_i32_0 : i32, i32
  }
  func.func @transform_7(%arg0: i32) -> (i32, i32) {
    %c0_i32 = arith.constant 0 : i32
    %c0_i32_0 = arith.constant 0 : i32
    %c0_i32_1 = arith.constant 0 : i32
    return %c0_i32, %c0_i32_0 : i32, i32
  }
  func.func @transform_8(%arg0: i32) -> (i32, i32) {
    %c0_i32 = arith.constant 0 : i32
    %c0_i32_0 = arith.constant 0 : i32
    %c0_i32_1 = arith.constant 0 : i32
    return %c0_i32, %c0_i32_0 : i32, i32
  }
  func.func @transform_9(%arg0: i32) -> (i32, i32) {
    %c0_i32 = arith.constant 0 : i32
    %c0_i32_0 = arith.constant 0 : i32
    return %arg0, %c0_i32 : i32, i32
  }
}

</mosaic_0001>

<bundles_post_ra>
// kernel: tpu_custom_call.1
= control target key start
LH: loop header
LB: loop body
LE: loop exit
PB: predicated region body
PF: predicated region fallthrough
CT: control target
= control target key end

     0   :  { %14 = vsyncpa [#allocation3], 0  ;;  %s630_s0 = inlined_call_operand.hbm [shape: f32[8,16], index: 0, kind: input, shape index: {}]   ;;  %s631_s1 = inlined_call_operand.hbm [shape: f32[16,128], index: 1, kind: input, shape index: {}]   ;;  %s632_s2 = inlined_call_operand.vmem [shape: f32[1,128], index: 2, kind: input, shape index: {}]   ;;  %s633_s3 = inlined_call_operand.hbm [shape: f32[128,128], index: 3, kind: input, shape index: {}]   ;;  %s634_s4 = inlined_call_operand.hbm [shape: f32[1,128], index: 4, kind: input, shape index: {}]   ;;  %s635_s5 = inlined_call_operand.hbm [shape: f32[128,128], index: 5, kind: input, shape index: {}]   ;;  %s636_s6 = inlined_call_operand.vmem [shape: f32[1,128], index: 6, kind: input, shape index: {}]   ;;  %s637_s7 = inlined_call_operand.hbm [shape: f32[128,256], index: 7, kind: input, shape index: {}]   ;;  %s638_s8 = inlined_call_operand.vmem [shape: f32[1,256], index: 8, kind: input, shape index: {}]   ;;  %s639_s9 = inlined_call_operand.hbm [shape: f32[8,256], index: 9, kind: output, shape index: {}]  }
   0x1   :  { %15 = vsyncpa [#allocation6], 0 }
   0x2   :  { %16 = vsyncpa [#allocation9], 0 }
   0x3   :  { %17 = vsyncpa [#allocation12], 0  ;;  %s34_s11 = sshll.u32 %s631_s1, 4  ;;  %s35_s11 = int_to_ptr.hbm [resolvable:$true] %s34_s11 }
   0x4   :  { %18 = vsyncpa [#allocation4], 0  ;;  %s530_s12 = smov [#allocation5]   ;;  %s63_s16 = sshll.u32 %s634_s4, 4  ;;  %s64_s16 = int_to_ptr.hbm [resolvable:$true] %s63_s16 }
   0x5   :  { %s36_s13 = sshll.u32 %s530_s12, 4  ;;  %s531_s17 = smov 128   ;;  %s37_s13 = int_to_ptr.vmem [resolvable:$true] %s36_s13 }
   0x6   :  { %s532_s18 = smov 8   ;;  %s533_s19 = smov [#allocation8]  }
   0x7   :  { %42 = dma.hbm_to_vmem [thread:$0]  %s35_s11, 256, %s37_s13, [#allocation6], %s531_s17, %s531_s17, %s532_s18  }
   0x8   :  { %s65_s20 = sshll.u32 %s533_s19, 4  ;;  %s24_s22 = sshll.u32 %s630_s0, 4  ;;  %s66_s20 = int_to_ptr.vmem [resolvable:$true] %s65_s20  ;;  %s25_s22 = int_to_ptr.hbm [resolvable:$true] %s24_s22 }
   0x9   :  { %68 = dma.hbm_to_vmem [thread:$0]  %s64_s16, 16, %s66_s20, [#allocation9]  }
   0xa   :  { %s49_s4 = sshll.u32 %s633_s3, 4  ;;  %s534_s25 = smov [#allocation2]   ;;  %s50_s4 = int_to_ptr.hbm [resolvable:$true] %s49_s4 }
   0xb   :  { %s26_s26 = sshll.u32 %s534_s25, 4  ;;  %s535_s27 = smov [#allocation7]   ;;  %s27_s26 = int_to_ptr.vmem [resolvable:$true] %s26_s26 }
   0xc   :  { %29 = dma.hbm_to_vmem [thread:$0]  %s25_s22, 128, %s27_s26, [#allocation3]  }
   0xd   :  { %s51_s28 = sshll.u32 %s535_s27, 4  ;;  %s73_s10 = sshll.u32 %s635_s5, 4  ;;  %s52_s28 = int_to_ptr.vmem [resolvable:$true] %s51_s28  ;;  %s74_s10 = int_to_ptr.hbm [resolvable:$true] %s73_s10 }
   0xe   :  { %57 = dma.hbm_to_vmem [thread:$0]  %s50_s4, 2048, %s52_s28, [#allocation6], %s531_s17, %s531_s17, %s532_s18  }
   0xf   :  { %s88_s3 = sshll.u32 %s637_s7, 4  ;;  %s536_s12 = smov [#allocation10]   ;;  %s89_s3 = int_to_ptr.hbm [resolvable:$true] %s88_s3 }
  0x10   :  { %s75_s13 = sshll.u32 %s536_s12, 4  ;;  %s537_s14 = smov [#allocation11]   ;;  %s76_s13 = int_to_ptr.vmem [resolvable:$true] %s75_s13 }
  0x11   :  { %81 = dma.hbm_to_vmem [thread:$0]  %s74_s10, 2048, %s76_s13, [#allocation9], %s531_s17, %s531_s17, %s532_s18  }
  0x12   :  { %s90_s5 = sshll.u32 %s537_s14, 4  ;;  %s538_s15 = smov 256   ;;  %s91_s5 = int_to_ptr.vmem [resolvable:$true] %s90_s5 }
  0x13   :  { %s539_s16 = smov 16  }
  0x14   :  { %96 = dma.hbm_to_vmem [thread:$0]  %s89_s3, 4096, %s91_s5, [#allocation12], %s538_s15, %s538_s15, %s539_s16  }
  0x15   :  { %520 = dma.done.wait [#allocation3], 128  }
  0x16   :  { %521 = vsyncadd [#allocation3], 4294967168 }
  0x17   :  { %522 = dma.done.wait [#allocation6], 2304  }
  0x18   :  { %523 = vsyncadd [#allocation6], 4294964992 }
  0x19   :  { %524 = dma.done.wait [#allocation9], 2064  }
  0x1a   :  { %525 = vsyncadd [#allocation9], 4294965232 }
  0x1b   :  { %526 = dma.done.wait [#allocation12], 4096  }
  0x1c   :  { %527 = vsyncadd [#allocation12], 4294963200  ;;  %v125_v0 = vld [vmem:[#allocation5 + $0x8] sm:$0xff]  ;;  %v124_v1 = vld [vmem:[#allocation5] sm:$0xff]  ;;  %vm130_vm0 = vcmask 130048   ;;  %s540_s21 = smov [#allocation13]  }
  0x1d   :  { %148 = vmatpush.msra.mxu0 %v125_v0  ;;  %v123_v2 = vld [vmem:[#allocation2] sm:$0xff]  ;;  %v170_v3 = vld [vmem:[#allocation7 + $0x78] sm:$0xff]  ;;  %v169_v4 = vld [vmem:[#allocation7 + $0x70] sm:$0xff]  ;;  %s322_s1 = sshll.u32 %s540_s21, 4  ;;  %s323_s1 = int_to_ptr.vmem [resolvable:$true] %s322_s1 }
  0x1e   :  { %175 = vmatpush.msra.mxu1 %v170_v3  ;;  %v168_v5 = vld [vmem:[#allocation7 + $0x68] sm:$0xff]  ;;  %v167_v6 = vld [vmem:[#allocation7 + $0x60] sm:$0xff]  ;;  %v166_v7 = vld [vmem:[#allocation7 + $0x58] sm:$0xff] }
  0x1f   :  { %149 = vmatpush.msra.mxu0 %v124_v1  ;;  %v165_v8 = vld [vmem:[#allocation7 + $0x50] sm:$0xff]  ;;  %v164_v9 = vld [vmem:[#allocation7 + $0x48] sm:$0xff]  ;;  %v163_v10 = vld [vmem:[#allocation7 + $0x40] sm:$0xff] }
  0x20   :  { %337 = vmatmul.msk.f32.vlgmr.msra.gmra.mxu0 %vm130_vm0, %v123_v2  ;;  %176 = vmatpush.msra.mxu1 %v169_v4  ;;  %v162_v11 = vld [vmem:[#allocation7 + $0x38] sm:$0xff]  ;;  %v161_v12 = vld [vmem:[#allocation7 + $0x30] sm:$0xff]  ;;  %v160_v13 = vld [vmem:[#allocation7 + $0x28] sm:$0xff] }
  0x21   :  { %v159_v14 = vld [vmem:[#allocation7 + $0x20] sm:$0xff]  ;;  %v158_v15 = vld [vmem:[#allocation7 + $0x18] sm:$0xff]  ;;  %v157_v16 = vld [vmem:[#allocation7 + $0x10] sm:$0xff] }
  0x22   :  { %177 = vmatpush.msra.mxu1 %v168_v5  ;;  %v156_v17 = vld [vmem:[#allocation7 + $0x8] sm:$0xff]  ;;  %v155_v18 = vld [vmem:[#allocation7] sm:$0xff]  ;;  %v210_v20 = vld [vmem:[#allocation10 + $0x70] sm:$0xff] }
  0x23   :  { %v211_v19 = vld [vmem:[#allocation10 + $0x78] sm:$0xff]  ;;  %v209_v21 = vld [vmem:[#allocation10 + $0x68] sm:$0xff]  ;;  %v208_v22 = vld [vmem:[#allocation10 + $0x60] sm:$0xff] }
  0x24   :  { %178 = vmatpush.msra.mxu1 %v167_v6  ;;  %216 = vmatpush.msra.mxu2 %v211_v19  ;;  %v207_v23 = vld [vmem:[#allocation10 + $0x58] sm:$0xff]  ;;  %v206_v24 = vld [vmem:[#allocation10 + $0x50] sm:$0xff]  ;;  %v205_v25 = vld [vmem:[#allocation10 + $0x48] sm:$0xff] }
  0x25   :  { %v204_v26 = vld [vmem:[#allocation10 + $0x40] sm:$0xff]  ;;  %v203_v27 = vld [vmem:[#allocation10 + $0x38] sm:$0xff]  ;;  %v202_v28 = vld [vmem:[#allocation10 + $0x30] sm:$0xff] }
  0x26   :  { %179 = vmatpush.msra.mxu1 %v166_v7  ;;  %217 = vmatpush.msra.mxu2 %v210_v20  ;;  %v201_v29 = vld [vmem:[#allocation10 + $0x28] sm:$0xff]  ;;  %v200_v30 = vld [vmem:[#allocation10 + $0x20] sm:$0xff]  ;;  %v199_v31 = vld [vmem:[#allocation10 + $0x18] sm:$0xff] }
  0x27   :  { %v349_v32 = vld [vmem:[%s632_s2] ss:$0 sm:$0xff]  ;;  %v198_v36 = vld [vmem:[#allocation10 + $0x10] sm:$0xff]  ;;  %v197_v37 = vld [vmem:[#allocation10 + $0x8] sm:$0xff] }
  0x28   :  { %180 = vmatpush.msra.mxu1 %v165_v8  ;;  %218 = vmatpush.msra.mxu2 %v209_v21  ;;  %v196_v38 = vld [vmem:[#allocation10] sm:$0xff]  ;;  %v267_v39 = vld [vmem:[#allocation11 + $0xf0] sm:$0xff]  ;;  %v268_v40 = vld [vmem:[#allocation11 + $0xf8] sm:$0xff] }
  0x29   :  { %v265_v41 = vld [vmem:[#allocation11 + $0xe0] sm:$0xff]  ;;  %275 = vmatpush.msra.mxu3 %v267_v39  ;;  %295 = vmatpush.msrb.mxu0 %v268_v40  ;;  %v266_v42 = vld [vmem:[#allocation11 + $0xe8] sm:$0xff]  ;;  %v263_v43 = vld [vmem:[#allocation11 + $0xd0] sm:$0xff] }
  0x2a   :  { %181 = vmatpush.msra.mxu1 %v164_v9  ;;  %219 = vmatpush.msra.mxu2 %v208_v22  ;;  %v264_v44 = vld [vmem:[#allocation11 + $0xd8] sm:$0xff]  ;;  %v261_v45 = vld [vmem:[#allocation11 + $0xc0] sm:$0xff]  ;;  %v262_v46 = vld [vmem:[#allocation11 + $0xc8] sm:$0xff] }
  0x2b   :  { %276 = vmatpush.msra.mxu3 %v265_v41  ;;  %296 = vmatpush.msrb.mxu0 %v266_v42  ;;  %v259_v47 = vld [vmem:[#allocation11 + $0xb0] sm:$0xff]  ;;  %v260_v48 = vld [vmem:[#allocation11 + $0xb8] sm:$0xff]  ;;  %v257_v49 = vld [vmem:[#allocation11 + $0xa0] sm:$0xff] }
  0x2c   :  { %182 = vmatpush.msra.mxu1 %v163_v10  ;;  %220 = vmatpush.msra.mxu2 %v207_v23  ;;  %v258_v50 = vld [vmem:[#allocation11 + $0xa8] sm:$0xff]  ;;  %v255_v51 = vld [vmem:[#allocation11 + $0x90] sm:$0xff]  ;;  %v256_v52 = vld [vmem:[#allocation11 + $0x98] sm:$0xff] }
  0x2d   :  { %277 = vmatpush.msra.mxu3 %v263_v43  ;;  %297 = vmatpush.msrb.mxu0 %v264_v44  ;;  %v253_v53 = vld [vmem:[#allocation11 + $0x80] sm:$0xff]  ;;  %v254_v54 = vld [vmem:[#allocation11 + $0x88] sm:$0xff]  ;;  %v251_v55 = vld [vmem:[#allocation11 + $0x70] sm:$0xff] }
  0x2e   :  { %183 = vmatpush.msra.mxu1 %v162_v11  ;;  %221 = vmatpush.msra.mxu2 %v206_v24  ;;  %v252_v56 = vld [vmem:[#allocation11 + $0x78] sm:$0xff]  ;;  %v249_v57 = vld [vmem:[#allocation11 + $0x60] sm:$0xff]  ;;  %v250_v58 = vld [vmem:[#allocation11 + $0x68] sm:$0xff] }
  0x2f   :  { %278 = vmatpush.msra.mxu3 %v261_v45  ;;  %298 = vmatpush.msrb.mxu0 %v262_v46  ;;  %v247_v59 = vld [vmem:[#allocation11 + $0x50] sm:$0xff]  ;;  %v248_v60 = vld [vmem:[#allocation11 + $0x58] sm:$0xff]  ;;  %v245_v61 = vld [vmem:[#allocation11 + $0x40] sm:$0xff] }
  0x30   :  { %184 = vmatpush.msra.mxu1 %v161_v12  ;;  %222 = vmatpush.msra.mxu2 %v205_v25  ;;  %v246_v62 = vld [vmem:[#allocation11 + $0x48] sm:$0xff]  ;;  %v243_v63 = vld [vmem:[#allocation11 + $0x30] sm:$0xff]  ;;  %v244_v0 = vld [vmem:[#allocation11 + $0x38] sm:$0xff] }
  0x31   :  { %279 = vmatpush.msra.mxu3 %v259_v47  ;;  %299 = vmatpush.msrb.mxu0 %v260_v48  ;;  %v350_v1 = vld [vmem:[#allocation8] ss:$0 sm:$0xff]  ;;  %v241_v5 = vld [vmem:[#allocation11 + $0x20] sm:$0xff]  ;;  %v242_v6 = vld [vmem:[#allocation11 + $0x28] sm:$0xff] }
  0x32   :  { %185 = vmatpush.msra.mxu1 %v160_v13  ;;  %223 = vmatpush.msra.mxu2 %v204_v26  ;;  %v239_v7 = vld [vmem:[#allocation11 + $0x10] sm:$0xff]  ;;  %v240_v8 = vld [vmem:[#allocation11 + $0x18] sm:$0xff]  ;;  %v237_v9 = vld [vmem:[#allocation11] sm:$0xff] }
  0x33   :  { %280 = vmatpush.msra.mxu3 %v257_v49  ;;  %300 = vmatpush.msrb.mxu0 %v258_v50  ;;  %v238_v10 = vld [vmem:[#allocation11 + $0x8] sm:$0xff]  ;;  %v351_v11 = vld [vmem:[%s636_s6] ss:$0 sm:$0xff]  ;;  %s324_s6 = sshll.u32 %s639_s9, 4  ;;  %s325_s6 = int_to_ptr.hbm [resolvable:$true] %s324_s6 }
  0x34   :  { %186 = vmatpush.msra.mxu1 %v159_v14  ;;  %224 = vmatpush.msra.mxu2 %v203_v27 }
  0x35   :  { %281 = vmatpush.msra.mxu3 %v255_v51  ;;  %301 = vmatpush.msrb.mxu0 %v256_v52 }
  0x36   :  { %187 = vmatpush.msra.mxu1 %v158_v15  ;;  %225 = vmatpush.msra.mxu2 %v202_v28  ;;  %v269_v15 = vld [vmem:[%s638_s8] sm:$0x3] }
  0x37   :  { %282 = vmatpush.msra.mxu3 %v253_v53  ;;  %302 = vmatpush.msrb.mxu0 %v254_v54  ;;  %v271_v19 = vperm.slane %v269_v15, 0 }
  0x38   :  { %188 = vmatpush.msra.mxu1 %v157_v16  ;;  %226 = vmatpush.msra.mxu2 %v201_v29  ;;  %v272_v16 = vperm.slane %v269_v15, 1 }
  0x39   :  { %283 = vmatpush.msra.mxu3 %v251_v55  ;;  %303 = vmatpush.msrb.mxu0 %v252_v56 }
  0x3a   :  { %189 = vmatpush.msra.mxu1 %v156_v17  ;;  %227 = vmatpush.msra.mxu2 %v200_v30 }
  0x3b   :  { %284 = vmatpush.msra.mxu3 %v249_v57  ;;  %304 = vmatpush.msrb.mxu0 %v250_v58 }
  0x3c   :  { %190 = vmatpush.msra.mxu1 %v155_v18  ;;  %228 = vmatpush.msra.mxu2 %v199_v31 }
  0x3d   :  { %285 = vmatpush.msra.mxu3 %v247_v59  ;;  %305 = vmatpush.msrb.mxu0 %v248_v60 }
  0x3e   :  { %229 = vmatpush.msra.mxu2 %v198_v36 }
  0x3f   :  { %286 = vmatpush.msra.mxu3 %v245_v61  ;;  %306 = vmatpush.msrb.mxu0 %v246_v62 }
  0x40   :  { %230 = vmatpush.msra.mxu2 %v197_v37 }
  0x41   :  { %287 = vmatpush.msra.mxu3 %v243_v63  ;;  %307 = vmatpush.msrb.mxu0 %v244_v0 }
  0x42   :  { %231 = vmatpush.msra.mxu2 %v196_v38 }
  0x43   :  { %288 = vmatpush.msra.mxu3 %v241_v5  ;;  %308 = vmatpush.msrb.mxu0 %v242_v6 }
  0x45   :  { %289 = vmatpush.msra.mxu3 %v239_v7  ;;  %309 = vmatpush.msrb.mxu0 %v240_v8 }
  0x47   :  { %290 = vmatpush.msra.mxu3 %v237_v9  ;;  %310 = vmatpush.msrb.mxu0 %v238_v10 }
  0x9d   :  { %v151_v33 = vpop.f32.mrf.mxu0 }
  0x9e   :  { %v152_v34 = vadd.f32 %v349_v32, %v151_v33 }
  0xa0   :  { %v154_v35 = vmax.f32 %v152_v34, 0.0 }
  0xa2   :  { %191 = vmatmul.f32.vlgmr.msra.gmra.mxu1 %v154_v35 }
 0x11f   :  { %v192_v2 = vpop.f32.mrf.mxu1 }
 0x120   :  { %v193_v3 = vadd.f32 %v350_v1, %v192_v2 }
 0x122   :  { %v195_v4 = vmax.f32 %v193_v3, 0.0 }
 0x124   :  { %232 = vmatmul.f32.vlgmr.msra.gmra.mxu2 %v195_v4 }
 0x1a7   :  { %v233_v12 = vpop.f32.mrf.mxu2 }
 0x1a8   :  { %v234_v13 = vadd.f32 %v351_v11, %v233_v12 }
 0x1aa   :  { %v236_v14 = vmax.f32 %v234_v13, 0.0 }
 0x1ac   :  { %291 = vmatmul.f32.vlgmr.msra.gmra.mxu3 %v236_v14  ;;  %311 = vmatmul.f32.vlgmr.msrb.gmra.mxu0 %v236_v14 }
 0x229   :  { %v312_v17 = vpop.f32.mrf.mxu0 }
 0x22a   :  { %v313_v18 = vadd.f32 %v312_v17, %v272_v16 }
 0x22c   :  { %316 = vst [vmem:[#allocation13 + $0x8] sm:$0xff] %v313_v18 }
 0x22f   :  { %v292_v20 = vpop.f32.mrf.mxu3 }
 0x230   :  { %v293_v21 = vadd.f32 %v292_v20, %v271_v19 }
 0x232   :  { %315 = vst [vmem:[#allocation13] sm:$0xff] %v293_v21 }
 0x233   :  { %327 = dma.vmem_to_hbm [thread:$0]  %s323_s1, 256, %s325_s6, [#allocation4]  }
 0x234   :  { %528 = dma.done.wait [#allocation4], 256  }
 0x235   :  { %529 = vsyncadd [#allocation4], 4294967040 }
 0x236   :  { %332 = vsyncpa [#allocation3], 1 }
 0x237   :  { %333 = vsyncpa [#allocation6], 1 }
 0x238   :  { %334 = vsyncpa [#allocation9], 1 }
 0x239   :  { %335 = vsyncpa [#allocation12], 1 }
 0x23a   :  { %336 = vsyncpa [#allocation4], 1 }

</bundles_post_ra>
